<compile_context>
chip_gen: v7x
topology: tpu7x:2x2x1
jax: 0.10.0
libtpu: 0.0.40
codegen_flags: <defaults>
</compile_context>

<pallas_src>
import functools

import jax
import jax.numpy as jnp
import numpy as np
from jax.experimental import pallas as pl
from jax.experimental.pallas import tpu as pltpu


def _downsample_kernel(x_ref, w_ref, b_ref, o_ref, *, row_tile, w_out, c_in):
    """One (batch, row-tile) step of conv3x3-s2 + folded BN + ReLU.

    x_ref : (1, He, We, 4*Cin) bf16  space-to-depth input, channels = [ee|oe|eo|oo]
    w_ref : (9*Cin, Coutp)     bf16  fused per-tap-group weights (see wrapper layout)
    b_ref : (1, Coutp)         f32   folded conv+BN bias
    o_ref : (1, TH*Woutp, Coutp)     flattened, lane-dense output tile
    """
    th, c = row_tile, c_in
    r0 = pl.multiple_of(pl.program_id(1) * th, th)

    def tap_group(dh, dw, c0, nk, w0):
        # (TH, Woutp, nk*C) patch @ (nk*C, Coutp) weight slice -> (TH*Woutp, Coutp) f32
        p = x_ref[0, pl.ds(r0 + dh, th), pl.ds(dw, w_out), pl.ds(c0 * c, nk * c)]
        p = p.reshape(th * w_out, nk * c)          # cheap: Woutp is a multiple of 8
        return jnp.dot(p, w_ref[pl.ds(w0 * c, nk * c), :],
                       preferred_element_type=jnp.float32)

    acc = tap_group(0, 0, 0, 4, 0)        # taps (0,0),(1,0),(0,1),(1,1)   K = 4C
    acc += tap_group(0, 1, 0, 2, 4)       # taps (0,2),(1,2)               K = 2C
    acc += tap_group(1, 0, 0, 1, 6)       # tap  (2,0)                     K = C
    acc += tap_group(1, 0, 2, 1, 7)       # tap  (2,1)                     K = C
    acc += tap_group(1, 1, 0, 1, 8)       # tap  (2,2)                     K = C

    o_ref[0] = jnp.maximum(acc + b_ref[...], 0.0).astype(o_ref.dtype)


def _round_up(v, m):
    return (v + m - 1) // m * m


def _vmem_limit_bytes():
    cap = 64 * 1024 * 1024
    try:
        cap = int(pltpu.get_tpu_info().vmem_capacity_bytes)
    except Exception:
        pass
    # ~40 MiB on v7x (64 MiB/TC), ~80 MiB on v5e/v6e (128 MiB); never exceed 100 MiB.
    return max(32 * 1024 * 1024, min(int(cap * 0.625), 100 * 1024 * 1024))


def _pick_row_tile(h_out, w_out_p, n_batch, target_rows=512):
    """Largest divisor of h_out with TH*Woutp <= target; keep >=2 h-steps if B==1."""
    best = 1
    for d in range(1, h_out + 1):
        if h_out % d != 0 or d * w_out_p > target_rows:
            continue
        if n_batch < 2 and h_out > 1 and h_out // d < 2:
            continue  # v7x has 2 TensorCores; keep the parallel grid >= 2 steps
        best = d
    return best


def downsample_pallas(x, conv_w, conv_b, bn_gamma, bn_beta, bn_mean, bn_var,
                      *, eps=1e-5, row_tile=None):
    """x: (B, Cin, H, W) f32; conv_w: (Cout, Cin, 3, 3); conv_b/bn_*: (Cout,)
    -> (B, Cout, H_out, W_out) matching Conv2d(3, stride=2, pad=1) + BN + ReLU."""
    B, C_in, H, W = x.shape
    C_out = conv_w.shape[0]
    H_out = (H + 2 - 3) // 2 + 1
    W_out = (W + 2 - 3) // 2 + 1
    W_out_p = _round_up(W_out, 8)        # sublane-friendly reshapes & dense stores
    C_out_p = _round_up(C_out, 128)      # lane-dense (unmasked) output stores

    # ---- fold inference BN into the conv, fuse taps per (dh, dw), pad, cast bf16 ----
    scale = bn_gamma / jnp.sqrt(bn_var + eps)                               # (Cout,)
    w_t = jnp.transpose(conv_w * scale[:, None, None, None], (2, 3, 1, 0))  # (3,3,Cin,Cout)
    # Row layout matches the kernel's tap groups and channel order [ee|oe|eo|oo]:
    w_cat = jnp.concatenate(
        [w_t[0, 0], w_t[1, 0], w_t[0, 1], w_t[1, 1],   # group (dh=0,dw=0), K=4C
         w_t[0, 2], w_t[1, 2],                          # group (dh=0,dw=1), K=2C
         w_t[2, 0], w_t[2, 1], w_t[2, 2]],              # (dh=1,dw=0) x2, (dh=1,dw=1)
        axis=0)                                         # (9*Cin, Cout)
    w_cat = jnp.pad(w_cat, ((0, 0), (0, C_out_p - C_out))).astype(jnp.bfloat16)
    b_f = (conv_b - bn_mean) * scale + bn_beta
    b_f = jnp.pad(b_f, (0, C_out_p - C_out)).reshape(1, C_out_p).astype(jnp.float32)

    # ---- NCHW -> NHWC, zero-pad, space-to-depth (one fused XLA pass over x) ----
    Hp = 2 * (H_out + 1)            # padded height/width as seen by the kernel
    Wp = 2 * (W_out_p + 1)          # (conv pad 1 + zero pad up to even / Woutp)
    x_pad = jnp.pad(jnp.transpose(x, (0, 2, 3, 1)),
                    ((0, 0), (1, Hp - H - 1), (1, Wp - W - 1), (0, 0)))
    He, We = Hp // 2, Wp // 2
    s2d = jnp.transpose(x_pad.reshape(B, He, 2, We, 2, C_in),
                        (0, 1, 3, 4, 2, 5)).reshape(B, He, We, 4 * C_in)
    s2d = s2d.astype(jnp.bfloat16)  # halves input DMA and VMEM residency

    if row_tile is None:
        row_tile = _pick_row_tile(H_out, W_out_p, B)
    assert H_out % row_tile == 0, (H_out, row_tile)

    kernel = functools.partial(_downsample_kernel, row_tile=row_tile,
                               w_out=W_out_p, c_in=C_in)

    out_flat = pl.pallas_call(
        kernel,
        out_shape=jax.ShapeDtypeStruct((B, H_out * W_out_p, C_out_p), x.dtype),
        grid_spec=pltpu.PrefetchScalarGridSpec(
            num_scalar_prefetch=0,
            grid=(B, H_out // row_tile),
            in_specs=[
                # resident across the row-tile axis (block index ignores h)
                pl.BlockSpec((1, He, We, 4 * C_in), lambda b, h: (b, 0, 0, 0)),
                pl.BlockSpec((9 * C_in, C_out_p), lambda b, h: (0, 0)),
                pl.BlockSpec((1, C_out_p), lambda b, h: (0, 0)),
            ],
            out_specs=pl.BlockSpec((1, row_tile * W_out_p, C_out_p),
                                   lambda b, h: (b, h, 0)),
        ),
        compiler_params=pltpu.CompilerParams(
            dimension_semantics=("parallel", "parallel"),
            vmem_limit_bytes=_vmem_limit_bytes(),
        ),
    )(s2d, w_cat, b_f)

    # un-flatten, drop Wout/Cout padding, back to NCHW
    out = out_flat.reshape(B, H_out, W_out_p, C_out_p)[:, :, :W_out, :C_out]
    # TODO(synk): return NHWC (and/or bf16) directly if the consumer accepts it to
    # save the transpose and half of the writeback bandwidth.
    return jnp.transpose(out, (0, 3, 1, 2))


def downsample_ref(x, conv_w, conv_b, bn_gamma, bn_beta, bn_mean, bn_var, eps=1e-5):
    """Pure-JAX reference mirroring the PyTorch forward (inference-mode BN)."""
    y = jax.lax.conv_general_dilated(
        x, conv_w, window_strides=(2, 2), padding=((1, 1), (1, 1)),
        dimension_numbers=("NCHW", "OIHW", "NCHW"),
        precision=jax.lax.Precision.HIGHEST)
    y = y + conv_b[None, :, None, None]
    y = (y - bn_mean[None, :, None, None]) * (
        bn_gamma / jnp.sqrt(bn_var + eps))[None, :, None, None]
    y = y + bn_beta[None, :, None, None]
    return jnp.maximum(y, 0.0)


if __name__ == "__main__":
    B, C_in, C_out, H, W = 2, 64, 48, 16, 16

    key = jax.random.PRNGKey(0)
    kx, kw, kb, kg, kbe, km, kv = jax.random.split(key, 7)

    x = jax.random.normal(kx, (B, C_in, H, W), dtype=jnp.float32)

    # Conv2d(Cin -> Cout, 3, stride=2, padding=1, bias=True), PyTorch-like init
    fan_in = C_in * 9
    bound = 1.0 / np.sqrt(fan_in)
    conv_w = jax.random.uniform(kw, (C_out, C_in, 3, 3),
                                minval=-bound, maxval=bound, dtype=jnp.float32)
    conv_b = jax.random.uniform(kb, (C_out,),
                                minval=-bound, maxval=bound, dtype=jnp.float32)

    # BatchNorm2d parameters / running stats (non-trivial, deterministic)
    bn_gamma = jax.random.uniform(kg, (C_out,), minval=0.5, maxval=1.5,
                                  dtype=jnp.float32)
    bn_beta = 0.1 * jax.random.normal(kbe, (C_out,), dtype=jnp.float32)
    bn_mean = 0.1 * jax.random.normal(km, (C_out,), dtype=jnp.float32)
    bn_var = jax.random.uniform(kv, (C_out,), minval=0.5, maxval=1.5,
                                dtype=jnp.float32)

    fn = jax.jit(downsample_pallas)
    out = jax.block_until_ready(
        fn(x, conv_w, conv_b, bn_gamma, bn_beta, bn_mean, bn_var))

    ref = downsample_ref(x, conv_w, conv_b, bn_gamma, bn_beta, bn_mean, bn_var)
    H_out, W_out = H // 2, W // 2
    assert out.shape == (B, C_out, H_out, W_out), out.shape
    # bf16 MXU inputs with f32 accumulation vs. f32 reference
    np.testing.assert_allclose(np.asarray(out), np.asarray(ref),
                               rtol=2e-2, atol=2e-2)
    print("KERNEL_OK")
</pallas_src>

<mosaic_0001>
module attributes {stable_mosaic.version = 11 : i64} {
  func.func @_downsample_kernel(%arg0: i32, %arg1: i32, %arg2: memref<1x9x9x256xbf16, #tpu.memory_space<vmem>>, %arg3: memref<576x128xbf16, #tpu.memory_space<vmem>>, %arg4: memref<1x128xf32, #tpu.memory_space<vmem>>, %arg5: memref<1x64x128xf32, #tpu.memory_space<vmem>>) attributes {dimension_semantics = [#tpu.dimension_semantics<parallel>, #tpu.dimension_semantics<parallel>], iteration_bounds = array<i64: 2, 1>, scalar_prefetch = 0 : i64, scratch_operands = 0 : i64, tpu.core_type = #tpu.core_type<tc>, window_params = [{transform_indices = @transform_0, window_bounds = array<i64: 1, 9, 9, 256>}, {pipeline_mode = #tpu.pipeline_mode<synchronous>, transform_indices = @transform_1, window_bounds = array<i64: 576, 128>}, {pipeline_mode = #tpu.pipeline_mode<synchronous>, transform_indices = @transform_2, window_bounds = array<i64: 1, 128>}, {transform_indices = @transform_3, window_bounds = array<i64: 1, 64, 128>}]} {
    %c8_i32 = arith.constant 8 : i32
    %0 = arith.muli %arg1, %c8_i32 : i32
    %1 = tpu.assume_multiple %0, 8 : i32
    %c0_i32 = arith.constant 0 : i32
    %2 = arith.addi %1, %c0_i32 : i32
    %c0 = arith.constant 0 : index
    %3 = arith.index_cast %2 : i32 to index
    %c0_0 = arith.constant 0 : index
    %c0_1 = arith.constant 0 : index
    %4 = vector.load %arg2[%c0, %3, %c0_0, %c0_1] : memref<1x9x9x256xbf16, #tpu.memory_space<vmem>>, vector<1x8x8x256xbf16>
    %5 = vector.shape_cast %4 : vector<1x8x8x256xbf16> to vector<8x8x256xbf16>
    %6 = vector.shape_cast %5 : vector<8x8x256xbf16> to vector<64x256xbf16>
    %c0_2 = arith.constant 0 : index
    %c0_3 = arith.constant 0 : index
    %7 = vector.load %arg3[%c0_2, %c0_3] : memref<576x128xbf16, #tpu.memory_space<vmem>>, vector<256x128xbf16>
    %cst = arith.constant dense<0.000000e+00> : vector<64x128xf32>
    %8 = tpu.matmul %6, %7, %cst {dimension_numbers = #tpu.dot_dimension_numbers<[1], [0], [0], [1], [0, 0, 1, 1], [], []>} : vector<64x256xbf16>, vector<256x128xbf16>, vector<64x128xf32> -> vector<64x128xf32>
    %c0_i32_4 = arith.constant 0 : i32
    %9 = arith.addi %1, %c0_i32_4 : i32
    %c0_5 = arith.constant 0 : index
    %10 = arith.index_cast %9 : i32 to index
    %c1 = arith.constant 1 : index
    %c0_6 = arith.constant 0 : index
    %11 = vector.load %arg2[%c0_5, %10, %c1, %c0_6] : memref<1x9x9x256xbf16, #tpu.memory_space<vmem>>, vector<1x8x8x128xbf16>
    %12 = vector.shape_cast %11 : vector<1x8x8x128xbf16> to vector<8x8x128xbf16>
    %13 = vector.shape_cast %12 : vector<8x8x128xbf16> to vector<64x128xbf16>
    %c256 = arith.constant 256 : index
    %c0_7 = arith.constant 0 : index
    %14 = vector.load %arg3[%c256, %c0_7] : memref<576x128xbf16, #tpu.memory_space<vmem>>, vector<128x128xbf16>
    %cst_8 = arith.constant dense<0.000000e+00> : vector<64x128xf32>
    %15 = tpu.matmul %13, %14, %cst_8 {dimension_numbers = #tpu.dot_dimension_numbers<[1], [0], [0], [1], [0, 0, 1, 1], [], []>} : vector<64x128xbf16>, vector<128x128xbf16>, vector<64x128xf32> -> vector<64x128xf32>
    %16 = arith.addf %8, %15 : vector<64x128xf32>
    %c1_i32 = arith.constant 1 : i32
    %17 = arith.addi %1, %c1_i32 : i32
    %c0_9 = arith.constant 0 : index
    %18 = arith.index_cast %17 : i32 to index
    %c0_10 = arith.constant 0 : index
    %c0_11 = arith.constant 0 : index
    %19 = vector.load %arg2[%c0_9, %18, %c0_10, %c0_11] : memref<1x9x9x256xbf16, #tpu.memory_space<vmem>>, vector<1x8x8x64xbf16>
    %20 = vector.shape_cast %19 : vector<1x8x8x64xbf16> to vector<8x8x64xbf16>
    %21 = vector.shape_cast %20 : vector<8x8x64xbf16> to vector<64x64xbf16>
    %c384 = arith.constant 384 : index
    %c0_12 = arith.constant 0 : index
    %22 = vector.load %arg3[%c384, %c0_12] : memref<576x128xbf16, #tpu.memory_space<vmem>>, vector<64x128xbf16>
    %cst_13 = arith.constant dense<0.000000e+00> : vector<64x128xf32>
    %23 = tpu.matmul %21, %22, %cst_13 {dimension_numbers = #tpu.dot_dimension_numbers<[1], [0], [0], [1], [0, 0, 1, 1], [], []>} : vector<64x64xbf16>, vector<64x128xbf16>, vector<64x128xf32> -> vector<64x128xf32>
    %24 = arith.addf %16, %23 : vector<64x128xf32>
    %c1_i32_14 = arith.constant 1 : i32
    %25 = arith.addi %1, %c1_i32_14 : i32
    %c0_15 = arith.constant 0 : index
    %26 = arith.index_cast %25 : i32 to index
    %c0_16 = arith.constant 0 : index
    %c128 = arith.constant 128 : index
    %27 = vector.load %arg2[%c0_15, %26, %c0_16, %c128] : memref<1x9x9x256xbf16, #tpu.memory_space<vmem>>, vector<1x8x8x64xbf16>
    %28 = vector.shape_cast %27 : vector<1x8x8x64xbf16> to vector<8x8x64xbf16>
    %29 = vector.shape_cast %28 : vector<8x8x64xbf16> to vector<64x64xbf16>
    %c448 = arith.constant 448 : index
    %c0_17 = arith.constant 0 : index
    %30 = vector.load %arg3[%c448, %c0_17] : memref<576x128xbf16, #tpu.memory_space<vmem>>, vector<64x128xbf16>
    %cst_18 = arith.constant dense<0.000000e+00> : vector<64x128xf32>
    %31 = tpu.matmul %29, %30, %cst_18 {dimension_numbers = #tpu.dot_dimension_numbers<[1], [0], [0], [1], [0, 0, 1, 1], [], []>} : vector<64x64xbf16>, vector<64x128xbf16>, vector<64x128xf32> -> vector<64x128xf32>
    %32 = arith.addf %24, %31 : vector<64x128xf32>
    %c1_i32_19 = arith.constant 1 : i32
    %33 = arith.addi %1, %c1_i32_19 : i32
    %c0_20 = arith.constant 0 : index
    %34 = arith.index_cast %33 : i32 to index
    %c1_21 = arith.constant 1 : index
    %c0_22 = arith.constant 0 : index
    %35 = vector.load %arg2[%c0_20, %34, %c1_21, %c0_22] : memref<1x9x9x256xbf16, #tpu.memory_space<vmem>>, vector<1x8x8x64xbf16>
    %36 = vector.shape_cast %35 : vector<1x8x8x64xbf16> to vector<8x8x64xbf16>
    %37 = vector.shape_cast %36 : vector<8x8x64xbf16> to vector<64x64xbf16>
    %c512 = arith.constant 512 : index
    %c0_23 = arith.constant 0 : index
    %38 = vector.load %arg3[%c512, %c0_23] : memref<576x128xbf16, #tpu.memory_space<vmem>>, vector<64x128xbf16>
    %cst_24 = arith.constant dense<0.000000e+00> : vector<64x128xf32>
    %39 = tpu.matmul %37, %38, %cst_24 {dimension_numbers = #tpu.dot_dimension_numbers<[1], [0], [0], [1], [0, 0, 1, 1], [], []>} : vector<64x64xbf16>, vector<64x128xbf16>, vector<64x128xf32> -> vector<64x128xf32>
    %40 = arith.addf %32, %39 : vector<64x128xf32>
    %c0_25 = arith.constant 0 : index
    %c0_26 = arith.constant 0 : index
    %41 = vector.load %arg4[%c0_25, %c0_26] : memref<1x128xf32, #tpu.memory_space<vmem>>, vector<1x128xf32>
    %42 = vector.broadcast %41 : vector<1x128xf32> to vector<64x128xf32>
    %43 = arith.addf %40, %42 : vector<64x128xf32>
    %cst_27 = arith.constant 0.000000e+00 : f32
    %44 = vector.broadcast %cst_27 : f32 to vector<64x128xf32>
    %45 = arith.maximumf %43, %44 : vector<64x128xf32>
    %c0_28 = arith.constant 0 : index
    %c0_29 = arith.constant 0 : index
    %c0_30 = arith.constant 0 : index
    %46 = vector.load %arg5[%c0_28, %c0_29, %c0_30] : memref<1x64x128xf32, #tpu.memory_space<vmem>>, vector<1x64x128xf32>
    %47 = vector.shape_cast %46 : vector<1x64x128xf32> to vector<64x128xf32>
    %48 = vector.shape_cast %45 : vector<64x128xf32> to vector<1x64x128xf32>
    tpu.vector_store %arg5[%c0_28, %c0_29, %c0_30], %48 {strides = array<i32>} : memref<1x64x128xf32, #tpu.memory_space<vmem>>, vector<1x64x128xf32>,
    return
  }
  func.func @transform_0(%arg0: i32, %arg1: i32) -> (i32, i32, i32, i32) {
    %c0_i32 = arith.constant 0 : i32
    %c0_i32_0 = arith.constant 0 : i32
    %c0_i32_1 = arith.constant 0 : i32
    %c0_i32_2 = arith.constant 0 : i32
    return %arg0, %c0_i32, %c0_i32_0, %c0_i32_1 : i32, i32, i32, i32
  }
  func.func @transform_1(%arg0: i32, %arg1: i32) -> (i32, i32) {
    %c0_i32 = arith.constant 0 : i32
    %c0_i32_0 = arith.constant 0 : i32
    %c0_i32_1 = arith.constant 0 : i32
    return %c0_i32, %c0_i32_0 : i32, i32
  }
  func.func @transform_2(%arg0: i32, %arg1: i32) -> (i32, i32) {
    %c0_i32 = arith.constant 0 : i32
    %c0_i32_0 = arith.constant 0 : i32
    %c0_i32_1 = arith.constant 0 : i32
    return %c0_i32, %c0_i32_0 : i32, i32
  }
  func.func @transform_3(%arg0: i32, %arg1: i32) -> (i32, i32, i32) {
    %c0_i32 = arith.constant 0 : i32
    %c0_i32_0 = arith.constant 0 : i32
    return %arg0, %arg1, %c0_i32 : i32, i32, i32
  }
}

</mosaic_0001>

<bundles_post_ra>
// kernel: downsample_pallas.1
= control target key start
LH: loop header
LB: loop body
LE: loop exit
PB: predicated region body
PF: predicated region fallthrough
CT: control target
= control target key end

     0   :  { %s1807_s12 = smov 0   ;;  %s1809_s13 = smov 0   ;;  %s2069_s0 = inlined_call_operand.vmem [shape: bf16[2,9,9,256], index: 0, kind: input, shape index: {}]   ;;  %s2070_s1 = inlined_call_operand.vmem [shape: bf16[576,128], index: 1, kind: input, shape index: {}]   ;;  %s2071_s2 = inlined_call_operand.vmem [shape: f32[1,128], index: 2, kind: input, shape index: {}]   ;;  %s2072_s3 = inlined_call_operand.vmem [shape: f32[2,64,128], index: 3, kind: output, shape index: {}]  }
   0x1   :  { %s1811_s14 = smov 0  }
   0x2 LB: > { %s25_s15 = sadd.s32 1, %s1781_s13  ;;  %p1390_p0 = scmp.ge.s32.totalorder %s1785_s14, 1  ;;  %s1785_s14 = sphi %s1811_s14, %s13_s14   ;;  %s1781_s13 = sphi %s1809_s13, %s2076_s13   ;;  %s1777_s12 = sphi %s1807_s12, %s2075_s12  }
   0x3   : > { %p27_p1 = scmp.ge.s32.totalorder %s25_s15, 2  ;;  %p151_p2 = scmp.lt.s32.totalorder %s1785_s14, 3 }
   0x5   : > { %s2078_s15 = smov (%p27_p1, %s25_s15), 0  ;;  %p152_p3 = pnand %p1390_p0, %p151_p2 }
   0x6   : > { %v1707_v0 = vld [vmem:[%s2070_s1 + $0x80] sm:$0xff] (!%p152_p3)   ;;  %v1710_v3 = vld [vmem:[%s2070_s1 + $0x88] sm:$0xff] (!%p152_p3)   ;;  %v1713_v6 = vld [vmem:[%s2070_s1 + $0x90] sm:$0xff] (!%p152_p3)   ;;  %p179_p4 = scmp.lt.s32.totalorder (!%p152_p3), %s1777_s12, 1  ;;  %vm255_vm0 = vsmask.f32 (!%p152_p3), 3328 }
   0x7   : > { %155 = sbr.rel (%p152_p3) target bundleno = 305 (0x131), region = 32  ;;  %v1708_v1 = vld [vmem:[%s2070_s1 + $0x40] sm:$0xff] (!%p152_p3)   ;;  %1578 = vmatprep.subr.bf16.mxu0 (!%p152_p3), %v1707_v0  ;;  %v1711_v4 = vld [vmem:[%s2070_s1 + $0x48] sm:$0xff] (!%p152_p3)   ;;  %v1714_v7 = vld [vmem:[%s2070_s1 + $0x50] sm:$0xff] (!%p152_p3)   ;;  %vm256_vm1 = vsmask.f32 (!%p152_p3), 7440 }
   0x8   : > { %v1709_v2 = vld [vmem:[%s2070_s1] sm:$0xff] (!%p152_p3)   ;;  %1514 = vmatprep.subr.bf16.mxu1 (!%p152_p3), %v1708_v1  ;;  %1579 = vmatpush3.bf16.msra.mxu0 (!%p152_p3), %v1707_v0  ;;  %v1712_v5 = vld [vmem:[%s2070_s1 + $0x8] sm:$0xff] (!%p152_p3)   ;;  %v1715_v8 = vld [vmem:[%s2070_s1 + $0x10] sm:$0xff] (!%p152_p3)   ;;  %vm780_vm3 = vcmask (!%p152_p3), 523264  }
   0x9   : > { %1515 = vmatpush3.bf16.msra.mxu1 (!%p152_p3), %v1709_v2  ;;  %1580 = vmatprep.subr.bf16.mxu0 (!%p152_p3), %v1710_v3  ;;  %v1716_v9 = vld [vmem:[%s2070_s1 + $0x98] sm:$0xff] (!%p152_p3)   ;;  %v1719_v12 = vld [vmem:[%s2070_s1 + $0xa0] sm:$0xff] (!%p152_p3)   ;;  %v1722_v15 = vld [vmem:[%s2070_s1 + $0xa8] sm:$0xff] (!%p152_p3)  }
   0xa   : > { %1516 = vmatprep.subr.bf16.mxu1 (!%p152_p3), %v1711_v4  ;;  %v1717_v10 = vld [vmem:[%s2070_s1 + $0x58] sm:$0xff] (!%p152_p3)   ;;  %v1720_v13 = vld [vmem:[%s2070_s1 + $0x60] sm:$0xff] (!%p152_p3)   ;;  %v1723_v16 = vld [vmem:[%s2070_s1 + $0x68] sm:$0xff] (!%p152_p3)  }
   0xb   : > { %v1718_v11 = vld [vmem:[%s2070_s1 + $0x18] sm:$0xff] (!%p152_p3)   ;;  %v1721_v14 = vld [vmem:[%s2070_s1 + $0x20] sm:$0xff] (!%p152_p3)   ;;  %v1724_v17 = vld [vmem:[%s2070_s1 + $0x28] sm:$0xff] (!%p152_p3)  }
   0xc   : > { %1581 = vmatpush3.bf16.msra.mxu0 (!%p152_p3), %v1710_v3  ;;  %v1725_v18 = vld [vmem:[%s2070_s1 + $0xb0] sm:$0xff] (!%p152_p3)   ;;  %v1728_v21 = vld [vmem:[%s2070_s1 + $0xb8] sm:$0xff] (!%p152_p3)   ;;  %v1734_v50 = vld [vmem:[%s2070_s1 + $0xc0] sm:$0xff] (!%p152_p3)  }
   0xd   : > { %1517 = vmatpush3.bf16.msra.mxu1 (!%p152_p3), %v1712_v5  ;;  %1582 = vmatprep.subr.bf16.mxu0 (!%p152_p3), %v1713_v6  ;;  %v1726_v19 = vld [vmem:[%s2070_s1 + $0x70] sm:$0xff] (!%p152_p3)   ;;  %v1729_v25 = vld [vmem:[%s2070_s1 + $0x78] sm:$0xff] (!%p152_p3)   ;;  %vm1924_vm2 = vmor (!%p152_p3), %vm255_vm0, %vm256_vm1 }
   0xe   : > { %1518 = vmatprep.subr.bf16.mxu1 %v1714_v7  ;;  %s2080_s12 = smov (!%p179_p4, %s1777_s12), 1  ;;  %v1727_v20 = vld [vmem:[%s2070_s1 + $0x30] sm:$0xff]   ;;  %v1730_v27 = vld [vmem:[%s2070_s1 + $0x38] sm:$0xff]   ;;  %v1735_v56 = vld [vmem:[%s2070_s1 + $0xe0] sm:$0xff]  }
   0xf   : > { %s1682_s27 = smul.u32 144, %s2080_s12  ;;  %s1501_s25 = sshll.u32 %s2080_s12, 6 }
  0x10   : > { %1583 = vmatpush3.bf16.msra.mxu0 %v1713_v6  ;;  %s2050_s28 = scalar_lea.vmem %s2072_s3, %s1501_s25 }
  0x11   : > { %1519 = vmatpush3.bf16.msra.mxu1 %v1715_v8  ;;  %1584 = vmatprep.subr.bf16.mxu0 %v1716_v9  ;;  %s1895_s9 = scalar_lea.vmem %s2069_s0, %s1682_s27 }
  0x12   : > { %1520 = vmatprep.subr.bf16.mxu1 %v1717_v10  ;;  %v239_v22 = vld [vmem:[%s1895_s9] sm:$0xf]  ;;  %v240_v23 = vld [vmem:[%s1895_s9 + $0x8] sm:$0x1]  ;;  %v241_v24 = vld [vmem:[%s1895_s9 + $0x10] sm:$0xf] }
  0x13   : > { %v242_v26 = vld [vmem:[%s1895_s9 + $0x18] sm:$0x1]  ;;  %v259_v28 = vshrl.u32 %v239_v22, 16  ;;  %v262_v29 = vshll.u32 %v239_v22, 16  ;;  %v268_v30 = vshll.u32 %v240_v23, 16  ;;  %v273_v31 = vshrl.u32 %v241_v24, 16 }
  0x14   : > { %1585 = vmatpush3.bf16.msra.mxu0 %v1716_v9  ;;  %v276_v32 = vshll.u32 %v241_v24, 16  ;;  %v282_v33 = vshll.u32 %v242_v26, 16  ;;  %v1733_v34 = vld [vmem:[%s1895_s9 + $0x4] ss:$16 sps:$4 sm:$0xff]   ;;  %v243_v39 = vld [vmem:[%s1895_s9 + $0x20] sm:$0xf] }
  0x15   : > { %1521 = vmatpush3.bf16.msra.mxu1 %v1718_v11  ;;  %1586 = vmatprep.subr.bf16.mxu0 %v1719_v12  ;;  %v261_v35 = vrot.slane %v259_v28, 4  ;;  %v264_v36 = vrot.slane %v262_v29, 5  ;;  %v270_v37 = vrot.slane %v268_v30, 5  ;;  %v275_v38 = vrot.slane %v273_v31, 4  ;;  %v1731_v42 = vld [vmem:[%s1895_s9] ss:$16 sps:$4 sm:$0xff]  }
  0x16   : > { %1522 = vmatprep.subr.bf16.mxu1 %v1720_v13  ;;  %v278_v40 = vrot.slane %v276_v32, 5  ;;  %v284_v41 = vrot.slane %v282_v33, 5  ;;  %683 = vmatprep.mubr.bf16.mxu1 %v1733_v34  ;;  %v244_v43 = vld [vmem:[%s1895_s9 + $0x28] sm:$0x1]  ;;  %v245_v44 = vld [vmem:[%s1895_s9 + $0x30] sm:$0xf] }
  0x17   : > { %v265_v45 = vor.u32 %v264_v36, %v261_v35  ;;  %v246_v46 = vld [vmem:[%s1895_s9 + $0x38] sm:$0x1]  ;;  %v287_v47 = vshrl.u32 %v243_v39, 16  ;;  %v290_v48 = vshll.u32 %v243_v39, 16  ;;  %v296_v49 = vshll.u32 %v244_v43, 16  ;;  %v1736_v23 = vld [vmem:[%s2070_s1 + $0xe8] sm:$0xff]  }
  0x18   : > { %1587 = vmatpush3.bf16.msra.mxu0 %v1719_v12  ;;  %v279_v52 = vor.u32 %v278_v40, %v275_v38  ;;  %v301_v53 = vshrl.u32 %v245_v44, 16  ;;  %v304_v54 = vshll.u32 %v245_v44, 16  ;;  %v310_v55 = vshll.u32 %v246_v46, 16  ;;  %v247_v5 = vld [vmem:[%s1895_s9 + $0x40] sm:$0xf]  ;;  %v1741_v46 = vld [vmem:[%s2070_s1 + $0xf0] sm:$0xff]  }
  0x19   : > { %1523 = vmatpush3.bf16.msra.mxu1 %v1721_v14  ;;  %1588 = vmatprep.subr.bf16.mxu0 %v1722_v15  ;;  %v266_v57 = vrot.slane %v265_v45, 4  ;;  %v289_v58 = vrot.slane %v287_v47, 4  ;;  %v292_v59 = vrot.slane %v290_v48, 5  ;;  %v298_v61 = vrot.slane %v296_v49, 5  ;;  %v248_v6 = vld [vmem:[%s1895_s9 + $0x48] sm:$0x1] }
  0x1a   : > { %1524 = vmatprep.subr.bf16.mxu1 %v1723_v16  ;;  %v280_v60 = vrot.slane %v279_v52, 4  ;;  %v303_v62 = vrot.slane %v301_v53, 4  ;;  %v306_v63 = vrot.slane %v304_v54, 5  ;;  %v312_v4 = vrot.slane %v310_v55, 5  ;;  %v249_v9 = vld [vmem:[%s1895_s9 + $0x50] sm:$0xf] }
  0x1b   : > { %v271_v0 = vsel %vm1924_vm2, %v266_v57, %v270_v37  ;;  %v293_v1 = vor.u32 %v292_v59, %v289_v58  ;;  %v250_v10 = vld [vmem:[%s1895_s9 + $0x58] sm:$0x1]  ;;  %v315_v11 = vshrl.u32 %v247_v5, 16  ;;  %v318_v13 = vshll.u32 %v247_v5, 16  ;;  %v252_v31 = vld [vmem:[%s1895_s9 + $0x68] sm:$0x1] }
  0x1c   : > { %1589 = vmatpush3.bf16.msra.mxu0 %v1722_v15  ;;  %v285_v2 = vsel %vm1924_vm2, %v280_v60, %v284_v41  ;;  %v307_v3 = vor.u32 %v306_v63, %v303_v62  ;;  %v324_v14 = vshll.u32 %v248_v6, 16  ;;  %v329_v15 = vshrl.u32 %v249_v9, 16  ;;  %v253_v32 = vld [vmem:[%s1895_s9 + $0x70] sm:$0xf]  ;;  %v254_v34 = vld [vmem:[%s1895_s9 + $0x78] sm:$0x1] }
  0x1d   : > { %1525 = vmatpush3.bf16.msra.mxu1 %v1724_v17  ;;  %1590 = vmatprep.subr.bf16.mxu0 %v1725_v18  ;;  %v1394_v7 = vcombine.low %v271_v0, %v285_v2  ;;  %v294_v8 = vrot.slane %v293_v1, 4  ;;  %v317_v17 = vrot.slane %v315_v11, 4  ;;  %v320_v24 = vrot.slane %v318_v13, 5  ;;  %v1743_v57 = vld [vmem:[%s1895_s9 + $0x44] ss:$16 sps:$4 sm:$0xff]   ;;  %v1742_v62 = vld [vmem:[%s2070_s1 + $0xf8] sm:$0xff]  }
  0x1e   : > { %1526 = vmatprep.subr.bf16.mxu1 %v1726_v19  ;;  %v308_v12 = vrot.slane %v307_v3, 4  ;;  %v338_v19 = vshll.u32 %v250_v10, 16  ;;  %v331_v26 = vrot.slane %v329_v15, 4  ;;  %v352_v37 = vshll.u32 %v252_v31, 16  ;;  %v1747_v60 = vld [vmem:[%s2070_s1 + $0xd0] sm:$0xff]  }
  0x1f   : > { %1594 = vmatprep.mubr.bf16.mxu0 %v1394_v7  ;;  %v299_v16 = vsel %vm1924_vm2, %v294_v8, %v298_v61  ;;  %v321_v33 = vor.u32 %v320_v24, %v317_v17  ;;  %v357_v39 = vshrl.u32 %v253_v32, 16  ;;  %v360_v40 = vshll.u32 %v253_v32, 16  ;;  %v1746_v63 = vld [vmem:[%s1895_s9 + $0x40] ss:$16 sps:$4 sm:$0xff]   ;;  %v1745_v2 = vld [vmem:[%s1895_s9 + $0x14] ss:$16 sps:$4 sm:$0xff]  }
  0x20   : > { %1591 = vmatpush3.bf16.msra.mxu0 %v1725_v18  ;;  %v332_v18 = vshll.u32 %v249_v9, 16  ;;  %v313_v22 = vsel %vm1924_vm2, %v308_v12, %v312_v4  ;;  %v340_v30 = vrot.slane %v338_v19, 5  ;;  %v366_v41 = vshll.u32 %v254_v34, 16  ;;  %v1749_v4 = vld [vmem:[%s2070_s1 + $0x100] sm:$0xff]   ;;  %v1755_v7 = vld [vmem:[%s2070_s1 + $0xd8] sm:$0xff]   ;;  %v1750_v9 = vld [vmem:[%s2070_s1 + $0x108] sm:$0xff]  }
  0x21   : > { %1527 = vmatpush3.bf16.msra.mxu1 %v1727_v20  ;;  %1592 = vmatprep.subr.bf16.mxu0 %v1728_v21  ;;  %v1737_v20 = vld [vmem:[%s1895_s9 + $0x24] ss:$16 sps:$4 sm:$0xff]   ;;  %v1395_v28 = vcombine.low %v299_v16, %v313_v22  ;;  %v322_v43 = vrot.slane %v321_v33, 4  ;;  %v354_v48 = vrot.slane %v352_v37, 5  ;;  %v359_v49 = vrot.slane %v357_v39, 4  ;;  %v1758_v39 = vld [vmem:[%s2070_s1 + $0x118] sm:$0xff]  }
  0x22   : > { %1528 = vmatprep.subr.bf16.mxu1 %v1729_v25  ;;  %v326_v25 = vrot.slane %v324_v14, 5  ;;  %v334_v29 = vrot.slane %v332_v18, 5  ;;  %v1751_v5 = vld [vmem:[%s1895_s9 + $0x64] ss:$16 sps:$4 sm:$0xff]   ;;  %v1754_v8 = vld [vmem:[%s1895_s9 + $0x60] ss:$16 sps:$4 sm:$0xff]  }
  0x23   : > { %v1748_v6 = vld [vmem:[%s1895_s9 + $0x34] ss:$16 sps:$4 sm:$0xff]   ;;  %v1759_v11 = vld [vmem:[%s1895_s9 + $0x10] ss:$16 sps:$4 sm:$0xff]   ;;  %v1471_v13 = vld [vmem:[%s1895_s9 + $0x18] sm:$0x1] }
  0x24   : > { %1593 = vmatpush3.bf16.msra.mxu0 %v1728_v21  ;;  %v1740_v21 = vld [vmem:[%s2070_s1 + $0xc8] sm:$0xff]   ;;  %v335_v38 = vor.u32 %v334_v29, %v331_v26  ;;  %v327_v52 = vsel %vm1924_vm2, %v322_v43, %v326_v25  ;;  %v1753_v10 = vld [vmem:[%s1895_s9 + $0x54] ss:$16 sps:$4 sm:$0xff]   ;;  %v1470_v12 = vld [vmem:[%s1895_s9 + $0x10] sm:$0xf]  ;;  %v1037_v19 = vshll.u32 %v1471_v13, 16 }
  0x25   : > { %1529 = vmatpush3.bf16.msra.mxu1 %v1730_v27  ;;  %1618 = vmatprep.subr.bf16.mxu0 %v1735_v56  ;;  %v251_v27 = vld [vmem:[%s1895_s9 + $0x60] sm:$0xf]  ;;  %v1473_v15 = vld [vmem:[%s1895_s9 + $0x28] sm:$0x1]  ;;  %v1757_v16 = vld [vmem:[%s2070_s1 + $0x110] sm:$0xff]   ;;  %v1028_v17 = vshrl.u32 %v1470_v12, 16 }
  0x26   : > { %1602 = vmatprep.subr.bf16.mxu1 %v1734_v50  ;;  %v343_v35 = vshrl.u32 %v251_v27, 16  ;;  %v346_v36 = vshll.u32 %v251_v27, 16  ;;  %v336_v47 = vrot.slane %v335_v38, 4  ;;  %v1472_v14 = vld [vmem:[%s1895_s9 + $0x20] sm:$0xf]  ;;  %v1031_v18 = vshll.u32 %v1470_v12, 16 }
  0x27   : > { %1595 = vmatmul.mubr.bf16.vlgmr.msra.gmra.mrb[0].mxu0 %v1395_v28  ;;  %v1051_v22 = vshll.u32 %v1473_v15, 16  ;;  %v1756_v24 = vld [vmem:[%s1895_s9 + $0x74] ss:$16 sps:$4 sm:$0xff]   ;;  %v1030_v25 = vrot.slane %v1028_v17, 4  ;;  %v1039_v27 = vrot.slane %v1037_v19, 5 }
  0x28   : > { %684 = vmatmul.mubr.bf16.vlgmr.msra.gmra.mrb[0].mxu1 %v1731_v42  ;;  %v1739_v42 = vld [vmem:[%s1895_s9 + $0x20] ss:$16 sps:$4 sm:$0xff]   ;;  %1619 = vmatpush3.bf16.msra.mxu0 %v1735_v56  ;;  %v345_v44 = vrot.slane %v343_v35, 4  ;;  %v348_v45 = vrot.slane %v346_v36, 5  ;;  %v341_v54 = vsel %vm1924_vm2, %v336_v47, %v340_v30  ;;  %v368_v56 = vrot.slane %v366_v41, 5 }
  0x29   : > { %1603 = vmatpush3.bf16.msra.mxu1 %v1734_v50  ;;  %691 = vmatprep.mubr.bf16.mxu1 %v1737_v20  ;;  %v362_v50 = vrot.slane %v360_v40, 5  ;;  %v1396_v58 = vcombine.low %v327_v52, %v341_v54  ;;  %v1042_v20 = vshrl.u32 %v1472_v14, 16  ;;  %v1033_v26 = vrot.slane %v1031_v18, 5  ;;  %v1474_v29 = vld [vmem:[%s1895_s9 + $0x30] sm:$0xf] }
  0x2a   : > { %1604 = vmatprep.subr.bf16.mxu1 %v1740_v21  ;;  %1620 = vmatprep.subr.bf16.mxu0 %v1736_v23  ;;  %v349_v53 = vor.u32 %v348_v45, %v345_v44  ;;  %v1053_v31 = vrot.slane %v1051_v22, 5  ;;  %v1475_v32 = vld [vmem:[%s1895_s9 + $0x38] sm:$0x1]  ;;  %v1476_v33 = vld [vmem:[%s1895_s9 + $0x40] sm:$0xf]  ;;  %v1056_v36 = vshrl.u32 %v1474_v29, 16 }
  0x2b   : > { %v363_v55 = vor.u32 %v362_v50, %v359_v49  ;;  %1598 = vmatprep.mubr.bf16.mxu0 %v1396_v58  ;;  %v1044_v28 = vrot.slane %v1042_v20, 4  ;;  %v1034_v34 = vor.u32 %v1033_v26, %v1030_v25  ;;  %v1477_v35 = vld [vmem:[%s1895_s9 + $0x48] sm:$0x1]  ;;  %v1059_v37 = vshll.u32 %v1474_v29, 16  ;;  %v1480_v58 = vld [vmem:[%s1895_s9 + $0x60] sm:$0xf] }
  0x2c   : > { %1621 = vmatpush3.bf16.msra.mxu0 %v1736_v23  ;;  %v350_v59 = vrot.slane %v349_v53, 4  ;;  %v1760_v23 = vld [vmem:[%s1895_s9 + $0x30] ss:$16 sps:$4 sm:$0xff]   ;;  %v1065_v38 = vshll.u32 %v1475_v32, 16  ;;  %v1070_v41 = vshrl.u32 %v1476_v33, 16  ;;  %v1079_v43 = vshll.u32 %v1477_v35, 16 }
  0x2d   : > { %1605 = vmatpush3.bf16.msra.mxu1 %v1740_v21  ;;  %v364_v61 = vrot.slane %v363_v55, 4  ;;  %1622 = vmatprep.subr.bf16.mxu0 %v1741_v46  ;;  %v1045_v21 = vshll.u32 %v1472_v14, 16  ;;  %v1035_v44 = vrot.slane %v1034_v34, 4  ;;  %v1058_v45 = vrot.slane %v1056_v36, 4  ;;  %v1761_v53 = vld [vmem:[%s1895_s9 + $0x50] ss:$16 sps:$4 sm:$0xff]  }
  0x2e   : > { %v355_v0 = vsel %vm1924_vm2, %v350_v59, %v354_v48  ;;  %1606 = vmatprep.subr.bf16.mxu1 %v1747_v60  ;;  %v1067_v47 = vrot.slane %v1065_v38, 5  ;;  %v1072_v49 = vrot.slane %v1070_v41, 4  ;;  %v1081_v52 = vrot.slane %v1079_v43, 5  ;;  %v1482_v13 = vld [vmem:[%s1895_s9 + $0x70] sm:$0xf] }
  0x2f   : > { %v369_v1 = vsel %vm1924_vm2, %v364_v61, %v368_v56  ;;  %v1047_v30 = vrot.slane %v1045_v21, 5  ;;  %v1040_v54 = vsel %vm1924_vm2, %v1035_v44, %v1039_v27  ;;  %v1478_v56 = vld [vmem:[%s1895_s9 + $0x50] sm:$0xf]  ;;  %v1481_v61 = vld [vmem:[%s1895_s9 + $0x68] sm:$0x1]  ;;  %v1112_v19 = vshrl.u32 %v1482_v13, 16 }
  0x30   : > { %692 = vmatmul.mubr.bf16.gmra.mrb[4].mxu1 %v1739_v42  ;;  %v1397_v3 = vcombine.low %v355_v0, %v369_v1  ;;  %1623 = vmatpush3.bf16.msra.mxu0 %v1741_v46  ;;  %v1073_v42 = vshll.u32 %v1476_v33, 16  ;;  %v1061_v46 = vrot.slane %v1059_v37, 5  ;;  %v1107_v12 = vshll.u32 %v1481_v61, 16  ;;  %v1483_v17 = vld [vmem:[%s1895_s9 + $0x78] sm:$0x1] }
  0x31   : > { %699 = vmatprep.mubr.bf16.mxu1 %v1743_v57  ;;  %1607 = vmatpush3.bf16.msra.mxu1 %v1747_v60  ;;  %v1048_v40 = vor.u32 %v1047_v30, %v1044_v28  ;;  %v1479_v57 = vld [vmem:[%s1895_s9 + $0x58] sm:$0x1]  ;;  %v1484_v18 = vld [vmem:[%s1895_s9 + $0x80] sm:$0xf]  ;;  %v1485_v22 = vld [vmem:[%s1895_s9 + $0x88] sm:$0x1] }
  0x32   : > { %1624 = vmatprep.subr.bf16.mxu0 %v1742_v62  ;;  %1599 = vmatmul.mubr.bf16.gmra.mrb[4].mxu0 %v1397_v3  ;;  %v1075_v50 = vrot.slane %v1073_v42, 5  ;;  %v1062_v55 = vor.u32 %v1061_v46, %v1058_v45  ;;  %v1098_v3 = vshrl.u32 %v1480_v58, 16  ;;  %v1109_v21 = vrot.slane %v1107_v12, 5 }
  0x33   : > { %1626 = vmatprep.mubr.msk.bf16.mxu0 %vm780_vm3, %v1745_v2  ;;  %1608 = vmatprep.subr.bf16.mxu1 %v1755_v7  ;;  %v1049_v48 = vrot.slane %v1048_v40, 4  ;;  %v1093_v2 = vshll.u32 %v1479_v57, 16  ;;  %v1114_v27 = vrot.slane %v1112_v19, 4  ;;  %v1126_v28 = vshrl.u32 %v1484_v18, 16 }
  0x34   : > { %1625 = vmatpush3.bf16.msra.mxu0 %v1742_v62  ;;  %v1076_v60 = vor.u32 %v1075_v50, %v1072_v49  ;;  %v1084_v62 = vshrl.u32 %v1478_v56, 16  ;;  %v1063_v1 = vrot.slane %v1062_v55, 4  ;;  %v1129_v30 = vshll.u32 %v1484_v18, 16 }
  0x35   : > { %1634 = vmatprep.subr.bf16.mxu0 %v1749_v4  ;;  %1609 = vmatpush3.bf16.msra.mxu1 %v1755_v7  ;;  %v1054_v59 = vsel %vm1924_vm2, %v1049_v48, %v1053_v31  ;;  %v1101_v7 = vshll.u32 %v1480_v58, 16  ;;  %v1135_v31 = vshll.u32 %v1485_v22, 16  ;;  %v1128_v34 = vrot.slane %v1126_v28, 4 }
  0x36   : > { %v1486_v0 = vcombine.low %v1040_v54, %v1054_v59  ;;  %v1131_v37 = vrot.slane %v1129_v30, 5 }
  0x37   : > { %v1137_v42 = vrot.slane %v1135_v31, 5 }
  0x38   : > { %700 = vmatmul.mubr.bf16.gmra.mrb[8].mxu1 %v1746_v63  ;;  %v1087_v63 = vshll.u32 %v1478_v56, 16  ;;  %v1132_v41 = vor.u32 %v1131_v37, %v1128_v34 }
  0x39   : > { %707 = vmatprep.mubr.bf16.mxu1 %v1751_v5  ;;  %v1086_v5 = vrot.slane %v1084_v62, 4 }
  0x3a   : > { %1627 = vmatmul.mubr.msk.bf16.vlgmr.msra.gmra.mrb[8].mxu0 %vm780_vm3, %v1748_v6  ;;  %v1089_v6 = vrot.slane %v1087_v63, 5  ;;  %v1133_v44 = vrot.slane %v1132_v41, 4 }
  0x3b   : > { %1635 = vmatpush3.bf16.msra.mxu0 %v1749_v4  ;;  %1630 = vmatprep.mubr.msk.bf16.mxu0 %vm780_vm3, %v1753_v10  ;;  %v1077_v4 = vrot.slane %v1076_v60, 4  ;;  %v1095_v10 = vrot.slane %v1093_v2, 5 }
  0x3c   : > { %1636 = vmatprep.subr.bf16.mxu0 %v1750_v9  ;;  %v1090_v15 = vor.u32 %v1089_v6, %v1086_v5  ;;  %v1138_v45 = vsel %vm1924_vm2, %v1133_v44, %v1137_v42 }
  0x3d   : > { %v1082_v14 = vsel %vm1924_vm2, %v1077_v4, %v1081_v52 }
  0x3e   : > { %v1091_v25 = vrot.slane %v1090_v15, 4 }
  0x3f   : > { %1637 = vmatpush3.bf16.msra.mxu0 %v1750_v9  ;;  %v1068_v9 = vsel %vm1924_vm2, %v1063_v1, %v1067_v47 }
  0x40   : > { %708 = vmatmul.mubr.bf16.gmra.mrb[12].mxu1 %v1754_v8  ;;  %1638 = vmatprep.subr.bf16.mxu0 %v1757_v16  ;;  %v1762_v8 = vld [vmem:[%s1895_s9 + $0x70] ss:$16 sps:$4 sm:$0xff]   ;;  %v1487_v20 = vcombine.low %v1068_v9, %v1082_v14  ;;  %v1096_v32 = vsel %vm1924_vm2, %v1091_v25, %v1095_v10 }
  0x41   : > { %1610 = vmatprep.mubr.msk.bf16.mxu1 %vm780_vm3, %v1759_v11  ;;  %v1100_v11 = vrot.slane %v1098_v3, 4 }
  0x42   : > { %1631 = vmatmul.mubr.msk.bf16.gmra.mrb[12].mxu0 %vm780_vm3, %v1756_v24  ;;  %v1121_v24 = vshll.u32 %v1483_v17, 16 }
  0x43   : > { %1639 = vmatpush3.bf16.msra.mxu0 %v1757_v16  ;;  %1642 = vmatprep.mubr.msk.bf16.mxu0 %vm780_vm3, %v1486_v0  ;;  %v1103_v16 = vrot.slane %v1101_v7, 5 }
  0x44   : > { %1640 = vmatprep.subr.bf16.mxu0 %v1758_v39  ;;  %v1123_v36 = vrot.slane %v1121_v24, 5 }
  0x45   : > { %v1104_v26 = vor.u32 %v1103_v16, %v1100_v11 }
  0x47   : > { %1641 = vmatpush3.bf16.msra.mxu0 %v1758_v39  ;;  %v1105_v33 = vrot.slane %v1104_v26, 4 }
  0x48   : > { %1611 = vmatmul.mubr.msk.bf16.vlgmr.msra.gmra.mrb[16].mxu1 %vm780_vm3, %v1760_v23  ;;  %v1115_v23 = vshll.u32 %v1482_v13, 16 }
  0x49   : > { %1614 = vmatprep.mubr.msk.bf16.mxu1 %vm780_vm3, %v1761_v53  ;;  %v1110_v38 = vsel %vm1924_vm2, %v1105_v33, %v1109_v21  ;;  %v1498_v33 = vld [vmem:[%s2071_s2] ss:$0 sm:$0xff] }
  0x4a   : > { %1643 = vmatmul.mubr.msk.bf16.vlgmr.msra.gmra.mrb[8].mxu0 %vm780_vm3, %v1487_v20  ;;  %v1117_v29 = vrot.slane %v1115_v23, 5  ;;  %v1488_v39 = vcombine.low %v1096_v32, %v1110_v38 }
  0x4c   : > { %v1118_v35 = vor.u32 %v1117_v29, %v1114_v27  ;;  %1646 = vmatprep.mubr.msk.bf16.mxu0 %vm780_vm3, %v1488_v39 }
  0x4e   : > { %v1119_v40 = vrot.slane %v1118_v35, 4 }
  0x50   : > { %1615 = vmatmul.mubr.msk.bf16.gmra.mrb[20].mxu1 %vm780_vm3, %v1762_v8  ;;  %v1124_v43 = vsel %vm1924_vm2, %v1119_v40, %v1123_v36 }
  0x51   : > { %v1489_v46 = vcombine.low %v1124_v43, %v1138_v45 }
  0x53   : > { %1647 = vmatmul.mubr.msk.bf16.gmra.mrb[12].mxu0 %vm780_vm3, %v1489_v46 }
  0xfa   : > { %v1596_v54 = vpop.f32.mrb[0].mxu0 }
  0xfb   : > { %v1530_v47 = vpop.f32.mrb[0].mxu1  ;;  %v484_v55 = vpop.f32.mrb[1].mxu0 }
  0xfc   : > { %v1531_v48 = vpop.f32.mrb[1].mxu1  ;;  %v1597_v56 = vpop.f32.mrb[2].mxu0 }
  0xfd   : > { %v1532_v49 = vadd.f32 %v1531_v48, %v1530_v47  ;;  %v1533_v50 = vpop.f32.mrb[2].mxu1  ;;  %v487_v59 = vpop.f32.mrb[3].mxu0 }
  0xfe   : > { %v1534_v52 = vpop.f32.mrb[3].mxu1 }
  0xff   : > { %v1535_v53 = vadd.f32 %v1534_v52, %v1533_v50  ;;  %v686_v58 = vadd.f32 %v1532_v49, %v484_v55 }
 0x101   : > { %v689_v51 = vadd.f32 %v1535_v53, %v487_v59 }
 0x103   : > { %v1536_v57 = vpop.f32.mrb[4].mxu1 }
 0x104   : > { %v1537_v60 = vpop.f32.mrb[5].mxu1 }
 0x105   : > { %v1538_v61 = vadd.f32 %v1537_v60, %v1536_v57  ;;  %v1539_v62 = vpop.f32.mrb[6].mxu1  ;;  %v1600_v4 = vpop.f32.mrb[4].mxu0 }
 0x106   : > { %v1540_v63 = vpop.f32.mrb[7].mxu1  ;;  %v500_v6 = vpop.f32.mrb[5].mxu0 }
 0x107   : > { %v1541_v0 = vadd.f32 %v1540_v63, %v1539_v62  ;;  %v694_v1 = vadd.f32 %v1596_v54, %v1538_v61  ;;  %v1601_v9 = vpop.f32.mrb[6].mxu0 }
 0x108   : > { %v503_v11 = vpop.f32.mrb[7].mxu0 }
 0x109   : > { %v697_v2 = vadd.f32 %v1597_v56, %v1541_v0 }
 0x10b   : > { %v1542_v3 = vpop.f32.mrb[8].mxu1 }
 0x10c   : > { %v1543_v5 = vpop.f32.mrb[9].mxu1 }
 0x10d   : > { %v1544_v7 = vadd.f32 %v1543_v5, %v1542_v3  ;;  %v1545_v8 = vpop.f32.mrb[10].mxu1 }
 0x10e   : > { %v1546_v10 = vpop.f32.mrb[11].mxu1 }
 0x10f   : > { %v1547_v12 = vadd.f32 %v1546_v10, %v1545_v8  ;;  %v702_v13 = vadd.f32 %v1544_v7, %v500_v6 }
 0x111   : > { %v705_v14 = vadd.f32 %v1547_v12, %v503_v11 }
 0x113   : > { %v1548_v15 = vpop.f32.mrb[12].mxu1 }
 0x114   : > { %v1549_v16 = vpop.f32.mrb[13].mxu1 }
 0x115   : > { %v1550_v17 = vadd.f32 %v1549_v16, %v1548_v15  ;;  %v1551_v18 = vpop.f32.mrb[14].mxu1 }
 0x116   : > { %v1552_v19 = vpop.f32.mrb[15].mxu1 }
 0x117   : > { %v1553_v20 = vadd.f32 %v1552_v19, %v1551_v18  ;;  %v710_v21 = vadd.f32 %v1600_v4, %v1550_v17 }
 0x119   : > { %v713_v22 = vadd.f32 %v1601_v9, %v1553_v20 }
 0x11b   : > { %v1612_v23 = vpop.f32.mrb[16].mxu1 }
 0x11c   : > { %v860_v24 = vadd.f32 %v1612_v23, %v694_v1  ;;  %v827_v25 = vpop.f32.mrb[17].mxu1 }
 0x11d   : > { %v858_v26 = vadd.f32 %v827_v25, %v686_v58  ;;  %v1613_v27 = vpop.f32.mrb[18].mxu1  ;;  %v1644_v32 = vpop.f32.mrb[8].mxu0 }
 0x11e   : > { %v861_v28 = vadd.f32 %v1613_v27, %v697_v2  ;;  %v830_v29 = vpop.f32.mrb[19].mxu1  ;;  %v1652_v36 = vadd.f32 %v1644_v32, %v860_v24  ;;  %v1229_v37 = vpop.f32.mrb[9].mxu0 }
 0x11f   : > { %v859_v30 = vadd.f32 %v830_v29, %v689_v51  ;;  %v1655_v40 = vadd.f32 %v1229_v37, %v858_v26  ;;  %v1645_v41 = vpop.f32.mrb[10].mxu0 }
 0x120   : > { %v1277_v44 = vadd.f32 %v1652_v36, %v1498_v33  ;;  %v1658_v45 = vadd.f32 %v1645_v41, %v861_v28  ;;  %v1232_v46 = vpop.f32.mrb[11].mxu0 }
 0x121   : > { %v1275_v48 = vadd.f32 %v1655_v40, %v1498_v33  ;;  %v1661_v49 = vadd.f32 %v1232_v46, %v859_v30 }
 0x122   : > { %v1285_v50 = vmax.f32 %v1277_v44, 0.0  ;;  %v1278_v52 = vadd.f32 %v1658_v45, %v1498_v33 }
 0x123   : > { %v1616_v31 = vpop.f32.mrb[20].mxu1  ;;  %v1283_v53 = vmax.f32 %v1275_v48, 0.0  ;;  %v1276_v54 = vadd.f32 %v1661_v49, %v1498_v33 }
 0x124   : > { %v864_v34 = vadd.f32 %v1616_v31, %v710_v21  ;;  %v843_v35 = vpop.f32.mrb[21].mxu1  ;;  %1293 = vst [vmem:[%s2050_s28 + $0x10] sm:$0xff] %v1285_v50  ;;  %v1286_v55 = vmax.f32 %v1278_v52, 0.0 }
 0x125   : > { %v862_v38 = vadd.f32 %v843_v35, %v702_v13  ;;  %v1617_v39 = vpop.f32.mrb[22].mxu1  ;;  %1291 = vst [vmem:[%s2050_s28] sm:$0xff] %v1283_v53  ;;  %v1284_v56 = vmax.f32 %v1276_v54, 0.0 }
 0x126   : > { %v865_v42 = vadd.f32 %v1617_v39, %v713_v22  ;;  %v846_v43 = vpop.f32.mrb[23].mxu1  ;;  %1294 = vst [vmem:[%s2050_s28 + $0x18] sm:$0xff] %v1286_v55  ;;  %v1648_v57 = vpop.f32.mrb[12].mxu0 }
 0x127   : > { %v863_v47 = vadd.f32 %v846_v43, %v705_v14  ;;  %1292 = vst [vmem:[%s2050_s28 + $0x8] sm:$0xff] %v1284_v56  ;;  %v1664_v58 = vadd.f32 %v1648_v57, %v864_v34  ;;  %v1245_v59 = vpop.f32.mrb[13].mxu0 }
 0x128   : > { %v1667_v60 = vadd.f32 %v1245_v59, %v862_v38  ;;  %v1649_v61 = vpop.f32.mrb[14].mxu0 }
 0x129   : > { %v1281_v62 = vadd.f32 %v1664_v58, %v1498_v33  ;;  %v1670_v51 = vadd.f32 %v1649_v61, %v865_v42  ;;  %v1248_v63 = vpop.f32.mrb[15].mxu0 }
 0x12a   : > { %v1279_v0 = vadd.f32 %v1667_v60, %v1498_v33  ;;  %v1673_v1 = vadd.f32 %v1248_v63, %v863_v47 }
 0x12b   : > { %v1289_v2 = vmax.f32 %v1281_v62, 0.0  ;;  %v1282_v3 = vadd.f32 %v1670_v51, %v1498_v33 }
 0x12c   : > { %v1287_v4 = vmax.f32 %v1279_v0, 0.0  ;;  %v1280_v5 = vadd.f32 %v1673_v1, %v1498_v33 }
 0x12d   : > { %1297 = vst [vmem:[%s2050_s28 + $0x30] sm:$0xff] %v1289_v2  ;;  %v1290_v6 = vmax.f32 %v1282_v3, 0.0 }
 0x12e   : > { %1295 = vst [vmem:[%s2050_s28 + $0x20] sm:$0xff] %v1287_v4  ;;  %v1288_v7 = vmax.f32 %v1280_v5, 0.0 }
 0x12f   : > { %1298 = vst [vmem:[%s2050_s28 + $0x38] sm:$0xff] %v1290_v6 }
 0x130   : > { %1296 = vst [vmem:[%s2050_s28 + $0x28] sm:$0xff] %v1288_v7 }
 0x131 PF: > { %s13_s14 = sadd.s32 1, %s1785_s14   ;;  %s2075_s12 = smov %s1781_s13 }
 0x132   : > { %p10_p5 = scmp.ge.s32.totalorder %s13_s14, 4   ;;  %s2076_s13 = smov %s2078_s15 }
 0x134   :  { %12 = sbr.rel (!%p10_p5) target bundleno = 2 (0x2), region = 64 }

</bundles_post_ra>
